<compile_context>
chip_gen: v6e
topology: v6e:2x2x1
jax: 0.10.0
libtpu: 0.0.40
codegen_flags: <defaults>
</compile_context>

<pallas_src>
import functools

import jax
import jax.numpy as jnp
import numpy as np
from jax import lax
from jax.experimental import pallas as pl
from jax.experimental.pallas import tpu as pltpu


# --------------------------------------------------------------------------
# Fused kernel: (first step) power iteration + sigma, (every step) one
# lane-dense MXU matmul for the 3x3 "same" conv, scaled by 1/sigma.
# --------------------------------------------------------------------------
def _sn_conv_kernel(u_ref, w_ref, wt_ref, b_ref, x_ref,
                    o_ref, u_out_ref, v_out_ref,
                    inv_sigma_ref,
                    *, power_iterations, eps):
    # ---- spectral norm: power iteration on the flattened weight ----------
    # Runs once (first grid step); 1/sigma is cached in SMEM scratch and u/v
    # are written once to their (constant-index) outputs.
    @pl.when(pl.program_id(0) == 0)
    def _power_iteration():
        # w: (height, width) = (Cout, Cin*KH*KW); u kept as a column.
        w = w_ref[...]
        u = u_ref[...]
        v = None
        wu = None
        for _ in range(power_iterations):
            # v = l2normalize(W^T u): column-broadcast mul + sublane reduce.
            wv = jnp.sum(w * u, axis=0, keepdims=True)            # (1, width)
            v = wv / (jnp.sqrt(jnp.sum(wv * wv)) + eps)
            # u = l2normalize(W v): row-broadcast mul + lane reduce.
            wu = jnp.sum(w * v, axis=1, keepdims=True)            # (height, 1)
            u = wu / (jnp.sqrt(jnp.sum(wu * wu)) + eps)
        # sigma = u . (W v) — reuse the final (un-normalized) wu = W v.
        sigma = jnp.sum(u * wu)
        inv_sigma_ref[0] = 1.0 / sigma
        u_out_ref[...] = u
        v_out_ref[...] = v

    # ---- conv: single lane-dense MXU matmul over the K-stacked operand ---
    # x_ref: (NB*H, KH*Wp*Cin), wt_ref: (KH*Wp*Cin, W*Cout)
    inv_sigma = inv_sigma_ref[0]
    acc = jnp.dot(x_ref[...], wt_ref[...],
                  preferred_element_type=jnp.float32)             # (NB*H, W*Cout)
    # conv(x, W/sigma) + b == conv(x, W) * (1/sigma) + b
    o_ref[...] = acc * inv_sigma + b_ref[...]


# --------------------------------------------------------------------------
# Wrapper-side weight prep: block-Toeplitz conv operand, flattened to
# (KH*Wp*Cin, W*Cout) so the whole conv is one matmul.
#   T[kh*(Wp*Cin) + (w+kw)*Cin + ci, w*Cout + co] = weight_hwio[kh, kw, ci, co]
# so that  out[h, w*Cout+co] = x_stack[h, :] @ T  with
#   x_stack[h, kh*(Wp*Cin) + r] = x_pad[h+kh, r].
# --------------------------------------------------------------------------
def _toeplitz_conv_weight(w_oihw, W_out, pad):
    Cout, Cin, KH, KW = w_oihw.shape
    Wp = W_out + 2 * pad
    w_hwio = jnp.transpose(w_oihw, (2, 3, 1, 0)).astype(jnp.float32)

    kh = jnp.arange(KH)[:, None, None, None, None]
    kw = jnp.arange(KW)[None, :, None, None, None]
    ci = jnp.arange(Cin)[None, None, :, None, None]
    wo = jnp.arange(W_out)[None, None, None, :, None]
    co = jnp.arange(Cout)[None, None, None, None, :]
    rows = (wo + kw) * Cin + ci
    cols = wo * Cout + co
    vals = w_hwio[:, :, :, None, :]

    full = (KH, KW, Cin, W_out, Cout)
    T = jnp.zeros((KH, Wp * Cin, W_out * Cout), jnp.float32)
    T = T.at[jnp.broadcast_to(kh, full),
             jnp.broadcast_to(rows, full),
             jnp.broadcast_to(cols, full)].set(jnp.broadcast_to(vals, full))
    return T.reshape(KH * Wp * Cin, W_out * Cout)


def _pick_batch_block(N, H, target_rows=256):
    """Largest divisor of N with roughly target_rows matmul rows per step."""
    nb = max(1, min(N, target_rows // max(H, 1)))
    while N % nb:
        nb -= 1
    return nb


# --------------------------------------------------------------------------
# SpectralNorm(Conv2d).forward equivalent (functional: returns new u, v).
# --------------------------------------------------------------------------
def spectral_norm_conv_forward(x, w_bar, b, u, v, *, power_iterations=1,
                               eps=1e-12, pad=1):
    del v  # v is overwritten by the first power iteration (matches PyTorch).
    assert power_iterations >= 1
    N, Cin, H, W = x.shape
    Cout, _, KH, KW = w_bar.shape
    assert KH == 2 * pad + 1 and KW == 2 * pad + 1, "same-conv layout assumed"
    height, width = Cout, Cin * KH * KW
    Hp, Wp = H + 2 * pad, W + 2 * pad

    NB = _pick_batch_block(N, H)          # images per grid step (toy: NB = N)
    assert N % NB == 0
    grid = (N // NB,)

    # Layout plumbing (outside the kernel): NCHW -> padded, K-stacked rows.
    x_nhwc = jnp.transpose(x, (0, 2, 3, 1))                       # (N,H,W,Cin)
    x_pad = jnp.pad(x_nhwc, ((0, 0), (pad, pad), (pad, pad), (0, 0)))
    x_slab = x_pad.reshape(N, Hp, Wp * Cin)                       # (N,Hp,Wp*Cin)
    # K-stacked operand: column kh*(Wp*Cin)+r holds x_pad[h+kh, r].
    x_stack = jnp.concatenate([x_slab[:, kh:kh + H, :] for kh in range(KH)],
                              axis=-1)                            # (N,H,KH*Wp*Cin)
    x_stack = x_stack.reshape(N * H, KH * Wp * Cin)

    w_mat = w_bar.reshape(height, width).astype(jnp.float32)  # power-iter view
    wt_flat = _toeplitz_conv_weight(w_bar, W, pad)       # (KH*Wp*Cin, W*Cout)
    b_row = jnp.tile(b.astype(jnp.float32), W).reshape(1, W * Cout)
    u_col = u.astype(jnp.float32).reshape(height, 1)

    kern = functools.partial(_sn_conv_kernel,
                             power_iterations=power_iterations, eps=eps)
    out_slab, u_out, v_out = pl.pallas_call(
        kern,
        grid=grid,
        in_specs=[
            pl.BlockSpec((height, 1), lambda i: (0, 0)),
            pl.BlockSpec((height, width), lambda i: (0, 0)),
            pl.BlockSpec((KH * Wp * Cin, W * Cout), lambda i: (0, 0)),
            pl.BlockSpec((1, W * Cout), lambda i: (0, 0)),
            pl.BlockSpec((NB * H, KH * Wp * Cin), lambda i: (i, 0)),
        ],
        out_specs=[
            pl.BlockSpec((NB * H, W * Cout), lambda i: (i, 0)),
            pl.BlockSpec((height, 1), lambda i: (0, 0)),
            pl.BlockSpec((1, width), lambda i: (0, 0)),
        ],
        out_shape=(
            jax.ShapeDtypeStruct((N * H, W * Cout), jnp.float32),
            jax.ShapeDtypeStruct((height, 1), jnp.float32),
            jax.ShapeDtypeStruct((1, width), jnp.float32),
        ),
        scratch_shapes=[pltpu.SMEM((1,), jnp.float32)],   # cached 1/sigma
        compiler_params=pltpu.CompilerParams(
            # "arbitrary": 1/sigma is a sequential carry across grid steps.
            # (Toy grid has a single step; for large N on v7x prefer
            #  "parallel" + per-step recompute of the tiny power iteration.)
            dimension_semantics=("arbitrary",)),
    )(u_col, w_mat, wt_flat, b_row, x_stack)

    # Lane-dense (N*H, W*Cout) slab -> NCHW for the PyTorch-facing interface.
    out = jnp.transpose(out_slab.reshape(N, H, W, Cout), (0, 3, 1, 2))
    return out, u_out.reshape(height), v_out.reshape(width)


def _l2normalize(v, eps=1e-12):
    return v / (jnp.linalg.norm(v) + eps)


if __name__ == "__main__":
    N, Cin, H, W = 2, 4, 16, 16
    Cout, KH, KW = 8, 3, 3

    key = jax.random.PRNGKey(0)
    k1, k2, k3, k4, k5 = jax.random.split(key, 5)
    # Deterministic synthetic parameters (nn.Conv2d(4, 8, 3, padding=1) shapes).
    w_bar = jax.random.normal(k1, (Cout, Cin, KH, KW), jnp.float32) * 0.1
    bias = jax.random.normal(k2, (Cout,), jnp.float32) * 0.1
    # SpectralNorm._make_params: u ~ N(0,1) of size height, v ~ N(0,1) of size
    # width, both l2-normalized once at construction.
    u0 = _l2normalize(jax.random.normal(k3, (Cout,), jnp.float32))
    v0 = _l2normalize(jax.random.normal(k4, (Cin * KH * KW,), jnp.float32))
    x = jax.random.normal(k5, (N, Cin, H, W), jnp.float32)

    out, u_new, v_new = spectral_norm_conv_forward(
        x, w_bar, bias, u0, v0, power_iterations=1)
    out = jax.block_until_ready(out)

    # ---- pure-JAX reference (same semantics as the PyTorch module) --------
    w_mat = w_bar.reshape(Cout, -1)
    v_r = _l2normalize(w_mat.T @ u0)
    u_r = _l2normalize(w_mat @ v_r)
    sigma = u_r @ (w_mat @ v_r)
    w_norm_ref = w_bar / sigma
    out_ref = lax.conv_general_dilated(
        x, w_norm_ref, window_strides=(1, 1), padding="SAME",
        dimension_numbers=("NCHW", "OIHW", "NCHW")) + bias[None, :, None, None]

    np.testing.assert_allclose(np.asarray(out), np.asarray(out_ref),
                               rtol=1e-4, atol=1e-5)
    np.testing.assert_allclose(np.asarray(u_new), np.asarray(u_r),
                               rtol=1e-4, atol=1e-5)
    np.testing.assert_allclose(np.asarray(v_new), np.asarray(v_r),
                               rtol=1e-4, atol=1e-5)
    print("KERNEL_OK")
</pallas_src>

<mosaic_0001>
module attributes {stable_mosaic.version = 11 : i64} {
  func.func @_sn_conv_kernel(%arg0: i32, %arg1: memref<8x1xf32, #tpu.memory_space<vmem>>, %arg2: memref<8x36xf32, #tpu.memory_space<vmem>>, %arg3: memref<216x128xf32, #tpu.memory_space<vmem>>, %arg4: memref<1x128xf32, #tpu.memory_space<vmem>>, %arg5: memref<32x216xf32, #tpu.memory_space<vmem>>, %arg6: memref<32x128xf32, #tpu.memory_space<vmem>>, %arg7: memref<8x1xf32, #tpu.memory_space<vmem>>, %arg8: memref<1x36xf32, #tpu.memory_space<vmem>>, %arg9: memref<1xf32, #tpu.memory_space<smem>>) attributes {dimension_semantics = [#tpu.dimension_semantics<arbitrary>], iteration_bounds = array<i64: 1>, scalar_prefetch = 0 : i64, scratch_operands = 1 : i64, tpu.core_type = #tpu.core_type<tc>, window_params = [{pipeline_mode = #tpu.pipeline_mode<synchronous>, transform_indices = @transform_0, window_bounds = array<i64: 8, 1>}, {pipeline_mode = #tpu.pipeline_mode<synchronous>, transform_indices = @transform_1, window_bounds = array<i64: 8, 36>}, {pipeline_mode = #tpu.pipeline_mode<synchronous>, transform_indices = @transform_2, window_bounds = array<i64: 216, 128>}, {pipeline_mode = #tpu.pipeline_mode<synchronous>, transform_indices = @transform_3, window_bounds = array<i64: 1, 128>}, {transform_indices = @transform_4, window_bounds = array<i64: 32, 216>}, {transform_indices = @transform_5, window_bounds = array<i64: 32, 128>}, {pipeline_mode = #tpu.pipeline_mode<synchronous>, transform_indices = @transform_6, window_bounds = array<i64: 8, 1>}, {pipeline_mode = #tpu.pipeline_mode<synchronous>, transform_indices = @transform_7, window_bounds = array<i64: 1, 36>}]} {
    %c0_i32 = arith.constant 0 : i32
    %0 = arith.cmpi eq, %arg0, %c0_i32 : i32
    %1 = arith.extui %0 : i1 to i32
    %c0_i32_0 = arith.constant 0 : i32
    %2 = arith.cmpi ne, %1, %c0_i32_0 : i32
    scf.if %2 {
      %c0_9 = arith.constant 0 : index
      %c0_10 = arith.constant 0 : index
      %13 = vector.load %arg2[%c0_9, %c0_10] : memref<8x36xf32, #tpu.memory_space<vmem>>, vector<8x36xf32>
      %c0_11 = arith.constant 0 : index
      %c0_12 = arith.constant 0 : index
      %14 = vector.load %arg1[%c0_11, %c0_12] : memref<8x1xf32, #tpu.memory_space<vmem>>, vector<8x1xf32>
      %15 = vector.broadcast %14 : vector<8x1xf32> to vector<8x36xf32>
      %16 = arith.mulf %13, %15 : vector<8x36xf32>
      %cst_13 = arith.constant dense<0.000000e+00> : vector<36xf32>
      %17 = vector.multi_reduction <add>, %16, %cst_13 [0] : vector<8x36xf32> to vector<36xf32>
      %18 = vector.shape_cast %17 : vector<36xf32> to vector<1x36xf32>
      %19 = arith.mulf %18, %18 : vector<1x36xf32>
      %20 = vector.shape_cast %19 : vector<1x36xf32> to vector<1x1x36xf32>
      %cst_14 = arith.constant dense<0.000000e+00> : vector<1xf32>
      %21 = vector.multi_reduction <add>, %20, %cst_14 [1, 2] : vector<1x1x36xf32> to vector<1xf32>
      %22 = vector.shape_cast %21 : vector<1xf32> to vector<1x1x1xf32>
      %23 = vector.extract %22[0, 0, 0] : f32 from vector<1x1x1xf32>
      %24 = math.sqrt %23 : f32
      %cst_15 = arith.constant 9.99999996E-13 : f32
      %25 = arith.addf %24, %cst_15 : f32
      %26 = vector.broadcast %25 : f32 to vector<1x36xf32>
      %27 = arith.divf %18, %26 : vector<1x36xf32>
      %28 = vector.broadcast %27 : vector<1x36xf32> to vector<8x36xf32>
      %29 = arith.mulf %13, %28 : vector<8x36xf32>
      %cst_16 = arith.constant dense<0.000000e+00> : vector<8xf32>
      %30 = vector.multi_reduction <add>, %29, %cst_16 [1] : vector<8x36xf32> to vector<8xf32>
      %31 = vector.shape_cast %30 : vector<8xf32> to vector<8x1xf32>
      %32 = arith.mulf %31, %31 : vector<8x1xf32>
      %33 = vector.shape_cast %32 : vector<8x1xf32> to vector<1x8x1xf32>
      %cst_17 = arith.constant dense<0.000000e+00> : vector<1xf32>
      %34 = vector.multi_reduction <add>, %33, %cst_17 [1, 2] : vector<1x8x1xf32> to vector<1xf32>
      %35 = vector.shape_cast %34 : vector<1xf32> to vector<1x1x1xf32>
      %36 = vector.extract %35[0, 0, 0] : f32 from vector<1x1x1xf32>
      %37 = math.sqrt %36 : f32
      %cst_18 = arith.constant 9.99999996E-13 : f32
      %38 = arith.addf %37, %cst_18 : f32
      %39 = vector.broadcast %38 : f32 to vector<8x1xf32>
      %40 = arith.divf %31, %39 : vector<8x1xf32>
      %41 = arith.mulf %40, %31 : vector<8x1xf32>
      %42 = vector.shape_cast %41 : vector<8x1xf32> to vector<1x8x1xf32>
      %cst_19 = arith.constant dense<0.000000e+00> : vector<1xf32>
      %43 = vector.multi_reduction <add>, %42, %cst_19 [1, 2] : vector<1x8x1xf32> to vector<1xf32>
      %44 = vector.shape_cast %43 : vector<1xf32> to vector<1x1x1xf32>
      %45 = vector.extract %44[0, 0, 0] : f32 from vector<1x1x1xf32>
      %cst_20 = arith.constant 1.000000e+00 : f32
      %46 = arith.divf %cst_20, %45 : f32
      %c0_21 = arith.constant 0 : index
      %47 = memref.load %arg9[%c0_21] : memref<1xf32, #tpu.memory_space<smem>>
      memref.store %46, %arg9[%c0_21] : memref<1xf32, #tpu.memory_space<smem>>
      %c0_22 = arith.constant 0 : index
      %c0_23 = arith.constant 0 : index
      %48 = vector.load %arg7[%c0_22, %c0_23] : memref<8x1xf32, #tpu.memory_space<vmem>>, vector<8x1xf32>
      tpu.vector_store %arg7[%c0_22, %c0_23], %40 {strides = array<i32>} : memref<8x1xf32, #tpu.memory_space<vmem>>, vector<8x1xf32>,
      %c0_24 = arith.constant 0 : index
      %c0_25 = arith.constant 0 : index
      %49 = vector.load %arg8[%c0_24, %c0_25] : memref<1x36xf32, #tpu.memory_space<vmem>>, vector<1x36xf32>
      tpu.vector_store %arg8[%c0_24, %c0_25], %27 {strides = array<i32>} : memref<1x36xf32, #tpu.memory_space<vmem>>, vector<1x36xf32>,
    } else {
    }
    %c0 = arith.constant 0 : index
    %3 = memref.load %arg9[%c0] : memref<1xf32, #tpu.memory_space<smem>>
    %c0_1 = arith.constant 0 : index
    %c0_2 = arith.constant 0 : index
    %4 = vector.load %arg5[%c0_1, %c0_2] : memref<32x216xf32, #tpu.memory_space<vmem>>, vector<32x216xf32>
    %c0_3 = arith.constant 0 : index
    %c0_4 = arith.constant 0 : index
    %5 = vector.load %arg3[%c0_3, %c0_4] : memref<216x128xf32, #tpu.memory_space<vmem>>, vector<216x128xf32>
    %cst = arith.constant dense<0.000000e+00> : vector<32x128xf32>
    %6 = tpu.matmul %4, %5, %cst {dimension_numbers = #tpu.dot_dimension_numbers<[1], [0], [0], [1], [0, 0, 1, 1], [], []>} : vector<32x216xf32>, vector<216x128xf32>, vector<32x128xf32> -> vector<32x128xf32>
    %7 = vector.broadcast %3 : f32 to vector<32x128xf32>
    %8 = arith.mulf %6, %7 : vector<32x128xf32>
    %c0_5 = arith.constant 0 : index
    %c0_6 = arith.constant 0 : index
    %9 = vector.load %arg4[%c0_5, %c0_6] : memref<1x128xf32, #tpu.memory_space<vmem>>, vector<1x128xf32>
    %10 = vector.broadcast %9 : vector<1x128xf32> to vector<32x128xf32>
    %11 = arith.addf %8, %10 : vector<32x128xf32>
    %c0_7 = arith.constant 0 : index
    %c0_8 = arith.constant 0 : index
    %12 = vector.load %arg6[%c0_7, %c0_8] : memref<32x128xf32, #tpu.memory_space<vmem>>, vector<32x128xf32>
    tpu.vector_store %arg6[%c0_7, %c0_8], %11 {strides = array<i32>} : memref<32x128xf32, #tpu.memory_space<vmem>>, vector<32x128xf32>,
    return
  }
  func.func @transform_0(%arg0: i32) -> (i32, i32) {
    %c0_i32 = arith.constant 0 : i32
    %c0_i32_0 = arith.constant 0 : i32
    %c0_i32_1 = arith.constant 0 : i32
    return %c0_i32, %c0_i32_0 : i32, i32
  }
  func.func @transform_1(%arg0: i32) -> (i32, i32) {
    %c0_i32 = arith.constant 0 : i32
    %c0_i32_0 = arith.constant 0 : i32
    %c0_i32_1 = arith.constant 0 : i32
    return %c0_i32, %c0_i32_0 : i32, i32
  }
  func.func @transform_2(%arg0: i32) -> (i32, i32) {
    %c0_i32 = arith.constant 0 : i32
    %c0_i32_0 = arith.constant 0 : i32
    %c0_i32_1 = arith.constant 0 : i32
    return %c0_i32, %c0_i32_0 : i32, i32
  }
  func.func @transform_3(%arg0: i32) -> (i32, i32) {
    %c0_i32 = arith.constant 0 : i32
    %c0_i32_0 = arith.constant 0 : i32
    %c0_i32_1 = arith.constant 0 : i32
    return %c0_i32, %c0_i32_0 : i32, i32
  }
  func.func @transform_4(%arg0: i32) -> (i32, i32) {
    %c0_i32 = arith.constant 0 : i32
    %c0_i32_0 = arith.constant 0 : i32
    return %arg0, %c0_i32 : i32, i32
  }
  func.func @transform_5(%arg0: i32) -> (i32, i32) {
    %c0_i32 = arith.constant 0 : i32
    %c0_i32_0 = arith.constant 0 : i32
    return %arg0, %c0_i32 : i32, i32
  }
  func.func @transform_6(%arg0: i32) -> (i32, i32) {
    %c0_i32 = arith.constant 0 : i32
    %c0_i32_0 = arith.constant 0 : i32
    %c0_i32_1 = arith.constant 0 : i32
    return %c0_i32, %c0_i32_0 : i32, i32
  }
  func.func @transform_7(%arg0: i32) -> (i32, i32) {
    %c0_i32 = arith.constant 0 : i32
    %c0_i32_0 = arith.constant 0 : i32
    %c0_i32_1 = arith.constant 0 : i32
    return %c0_i32, %c0_i32_0 : i32, i32
  }
}

</mosaic_0001>

<bundles_post_ra>
// kernel: tpu_custom_call.1
= control target key start
LH: loop header
LB: loop body
LE: loop exit
PB: predicated region body
PF: predicated region fallthrough
CT: control target
= control target key end

     0   :  { %13 = vsyncpa [#allocation4], 0  ;;  %s666_s0 = inlined_call_operand.vmem [shape: f32[8,1], index: 0, kind: input, shape index: {}]   ;;  %s667_s1 = inlined_call_operand.vmem [shape: f32[8,36], index: 1, kind: input, shape index: {}]   ;;  %s668_s2 = inlined_call_operand.hbm [shape: f32[216,128], index: 2, kind: input, shape index: {}]   ;;  %s669_s3 = inlined_call_operand.vmem [shape: f32[1,128], index: 3, kind: input, shape index: {}]   ;;  %s670_s4 = inlined_call_operand.hbm [shape: f32[32,216], index: 4, kind: input, shape index: {}]   ;;  %s671_s5 = inlined_call_operand.hbm [shape: f32[32,128], index: 5, kind: output, shape index: {0}]   ;;  %s672_s6 = inlined_call_operand.vmem [shape: f32[8,1], index: 6, kind: output, shape index: {1}]   ;;  %s673_s7 = inlined_call_operand.hbm [shape: f32[1,36], index: 7, kind: output, shape index: {2}]  }
   0x1   :  { %14 = vsyncpa [#allocation7], 0 }
   0x2   :  { %15 = vsyncpa [#allocation5], 0 }
   0x3   :  { %16 = vsyncpa [#allocation10], 0  ;;  %s515_s24 = smov [#allocation3]  }
   0x4   :  { %s26_s25 = sshll.u32 %s515_s24, 4  ;;  %s27_s25 = int_to_ptr.vmem [resolvable:$true] %s26_s25 }
   0x5   :  { %s435_s26 = scalar_lea.vmem %s27_s25, 3456  ;;  %p440_p1 = scmp.lt.s32.totalorder %s27_s25, %s27_s25 }
   0x6   :  { %p436_p0 = scmp.ne.s32.totalorder %s27_s25, %s435_s26  ;;  %p441_p2 = scmp.lt.s32.totalorder %s435_s26, %s435_s26 }
   0x8   :  { %p442_p3 = por %p441_p2, %p440_p1 }
   0xa   :  { %p443_p4 = pnand %p442_p3, %p436_p0 }
   0xc   :  { %446 = shalt.err (!%p443_p4)
}
   0xd   :  { %s516_s27 = smov 128   ;;  %s517_s28 = smov 8  }
   0xe   :  { %32 = dma.hbm_to_vmem [thread:$0]  %s668_s2, 3456, %s27_s25, [#allocation4], %s516_s27, %s516_s27, %s517_s28  }
   0xf   :  { %s518_s8 = smov [#allocation6]  }
  0x10   :  { %s40_s9 = sshll.u32 %s518_s8, 4  ;;  %s41_s9 = int_to_ptr.vmem [resolvable:$true] %s40_s9 }
  0x11   :  { %s455_s10 = scalar_lea.vmem %s41_s9, 1024  ;;  %p460_p6 = scmp.lt.s32.totalorder %s41_s9, %s41_s9 }
  0x12   :  { %p456_p5 = scmp.ne.s32.totalorder %s41_s9, %s455_s10  ;;  %p461_p7 = scmp.lt.s32.totalorder %s455_s10, %s455_s10 }
  0x14   :  { %p462_p8 = por %p461_p7, %p460_p6 }
  0x16   :  { %p463_p9 = pnand %p462_p8, %p456_p5 }
  0x18   :  { %466 = shalt.err (!%p463_p9)
}
  0x19   :  { %s519_s11 = smov 256   ;;  %s520_s12 = smov 16  }
  0x1a   :  { %46 = dma.hbm_to_vmem [thread:$0]  %s670_s4, 1024, %s41_s9, [#allocation7], %s519_s11, %s519_s11, %s520_s12  }
  0x1b   :  { %507 = dma.done.wait [#allocation4], 3456  }
  0x1c   :  { %508 = vsyncadd [#allocation4], 4294963840 }
  0x1d   :  { %509 = dma.done.wait [#allocation7], 1024  }
  0x1e   :  { %510 = vsyncadd [#allocation7], 4294966272  ;;  %v521_v0 = vmov 0   ;;  %v58_v1 = vld [vmem:[%s666_s0] sm:$0xff]  ;;  %vm65_vm0 = vcmask 293888   ;;  %vm74_vm1 = vcmask 286720  }
  0x1f   :  { %416 = vset.pattern.permute.xlu0 %v521_v0  ;;  %v57_v2 = vld [vmem:[%s667_s1] sm:$0xff]  ;;  %vm103_vm4 = vcmask 7168   ;;  %v169_v42 = vld [vmem:[#allocation3 + $0x78] sm:$0xff]  ;;  %v522_v43 = vmov 0.0   ;;  %v168_v44 = vld [vmem:[#allocation3 + $0x70] sm:$0xff]  ;;  %vm181_vm5 = vcmask 719872  }
  0x20   :  { %61 = vperm.xlu0 %416, %v58_v1   ;;  %194 = vmatprep.subr.mxu0 %v522_v43  ;;  %v167_v45 = vld [vmem:[#allocation3 + $0x68] sm:$0xff]  ;;  %v166_v46 = vld [vmem:[#allocation3 + $0x60] sm:$0xff]  ;;  %v165_v47 = vld [vmem:[#allocation3 + $0x58] sm:$0xff]  ;;  %s523_s23 = smov [#allocation9]  }
  0x21   :  { %340 = vmatprep.subr.mxu1 %v522_v43  ;;  %195 = vmatpush1.msra.mxu0 %v169_v42  ;;  %v164_v48 = vld [vmem:[#allocation3 + $0x50] sm:$0xff]  ;;  %v163_v49 = vld [vmem:[#allocation3 + $0x48] sm:$0xff]  ;;  %v162_v50 = vld [vmem:[#allocation3 + $0x40] sm:$0xff]  ;;  %s319_s24 = sshll.u32 %s523_s23, 4  ;;  %s320_s24 = int_to_ptr.vmem [resolvable:$true] %s319_s24 }
  0x22   :  { %367 = vmatpush1.msra.mxu1 %v169_v42  ;;  %196 = vmatprep.subr.mxu0 %v522_v43  ;;  %v161_v51 = vld [vmem:[#allocation3 + $0x38] sm:$0xff]  ;;  %v160_v52 = vld [vmem:[#allocation3 + $0x30] sm:$0xff]  ;;  %v159_v53 = vld [vmem:[#allocation3 + $0x28] sm:$0xff]  ;;  %s467_s25 = scalar_lea.vmem %s320_s24, 16  ;;  %p472_p11 = scmp.lt.s32.totalorder %s320_s24, %s320_s24 }
  0x23   :  { %341 = vmatprep.subr.mxu1 %v522_v43  ;;  %197 = vmatpush1.msra.mxu0 %v168_v44  ;;  %v158_v54 = vld [vmem:[#allocation3 + $0x20] sm:$0xff]  ;;  %v157_v55 = vld [vmem:[#allocation3 + $0x18] sm:$0xff]  ;;  %v156_v56 = vld [vmem:[#allocation3 + $0x10] sm:$0xff]  ;;  %p468_p10 = scmp.ne.s32.totalorder %s320_s24, %s467_s25 }
  0x24   :  { %368 = vmatpush1.msra.mxu1 %v168_v44  ;;  %198 = vmatprep.subr.mxu0 %v522_v43  ;;  %v155_v57 = vld [vmem:[#allocation3 + $0x8] sm:$0xff]  ;;  %v154_v58 = vld [vmem:[#allocation3] sm:$0xff]  ;;  %v180_v59 = vld [vmem:[#allocation3 + $0xd0] sm:$0xff] }
  0x25   :  { %342 = vmatprep.subr.mxu1 %v522_v43  ;;  %199 = vmatpush1.msra.mxu0 %v167_v45  ;;  %v179_v60 = vld [vmem:[#allocation3 + $0xc8] sm:$0xff]  ;;  %v178_v61 = vld [vmem:[#allocation3 + $0xc0] sm:$0xff]  ;;  %v177_v63 = vld [vmem:[#allocation3 + $0xb8] sm:$0xff] }
  0x26   :  { %369 = vmatpush1.msra.mxu1 %v167_v45  ;;  %200 = vmatprep.subr.mxu0 %v522_v43  ;;  %v176_v0 = vld [vmem:[#allocation3 + $0xb0] sm:$0xff]  ;;  %v175_v1 = vld [vmem:[#allocation3 + $0xa8] sm:$0xff] }
  0x27   :  { %343 = vmatprep.subr.mxu1 %v522_v43  ;;  %201 = vmatpush1.msra.mxu0 %v166_v46 }
  0x28   :  { %370 = vmatpush1.msra.mxu1 %v166_v46  ;;  %202 = vmatprep.subr.mxu0 %v522_v43 }
  0x29   :  { %344 = vmatprep.subr.mxu1 %v522_v43  ;;  %203 = vmatpush1.msra.mxu0 %v165_v47 }
  0x2a   :  { %371 = vmatpush1.msra.mxu1 %v165_v47  ;;  %204 = vmatprep.subr.mxu0 %v522_v43 }
  0x2b   :  { %345 = vmatprep.subr.mxu1 %v522_v43  ;;  %205 = vmatpush1.msra.mxu0 %v164_v48 }
  0x2c   :  { %372 = vmatpush1.msra.mxu1 %v164_v48  ;;  %206 = vmatprep.subr.mxu0 %v522_v43 }
  0x2d   :  { %346 = vmatprep.subr.mxu1 %v522_v43  ;;  %207 = vmatpush1.msra.mxu0 %v163_v49 }
  0x2e   :  { %373 = vmatpush1.msra.mxu1 %v163_v49  ;;  %208 = vmatprep.subr.mxu0 %v522_v43 }
  0x2f   :  { %347 = vmatprep.subr.mxu1 %v522_v43  ;;  %209 = vmatpush1.msra.mxu0 %v162_v50 }
  0x30   :  { %374 = vmatpush1.msra.mxu1 %v162_v50  ;;  %210 = vmatprep.subr.mxu0 %v522_v43 }
  0x31   :  { %348 = vmatprep.subr.mxu1 %v522_v43  ;;  %211 = vmatpush1.msra.mxu0 %v161_v51 }
  0x32   :  { %375 = vmatpush1.msra.mxu1 %v161_v51  ;;  %212 = vmatprep.subr.mxu0 %v522_v43 }
  0x33   :  { %349 = vmatprep.subr.mxu1 %v522_v43  ;;  %213 = vmatpush1.msra.mxu0 %v160_v52 }
  0x34   :  { %376 = vmatpush1.msra.mxu1 %v160_v52  ;;  %214 = vmatprep.subr.mxu0 %v522_v43 }
  0x35   :  { %350 = vmatprep.subr.mxu1 %v522_v43  ;;  %215 = vmatpush1.msra.mxu0 %v159_v53 }
  0x36   :  { %377 = vmatpush1.msra.mxu1 %v159_v53  ;;  %216 = vmatprep.subr.mxu0 %v522_v43 }
  0x37   :  { %351 = vmatprep.subr.mxu1 %v522_v43  ;;  %217 = vmatpush1.msra.mxu0 %v158_v54 }
  0x38   :  { %378 = vmatpush1.msra.mxu1 %v158_v54  ;;  %218 = vmatprep.subr.mxu0 %v522_v43 }
  0x39   :  { %352 = vmatprep.subr.mxu1 %v522_v43  ;;  %219 = vmatpush1.msra.mxu0 %v157_v55 }
  0x3a   :  { %379 = vmatpush1.msra.mxu1 %v157_v55  ;;  %220 = vmatprep.subr.mxu0 %v522_v43 }
  0x3b   :  { %353 = vmatprep.subr.mxu1 %v522_v43  ;;  %221 = vmatpush1.msra.mxu0 %v156_v56 }
  0x3c   :  { %380 = vmatpush1.msra.mxu1 %v156_v56  ;;  %222 = vmatprep.subr.mxu0 %v522_v43 }
  0x3d   :  { %354 = vmatprep.subr.mxu1 %v522_v43  ;;  %223 = vmatpush1.msra.mxu0 %v155_v57 }
  0x3e   :  { %381 = vmatpush1.msra.mxu1 %v155_v57  ;;  %224 = vmatprep.subr.mxu0 %v522_v43 }
  0x3f   :  { %355 = vmatprep.subr.mxu1 %v522_v43  ;;  %225 = vmatpush1.msra.mxu0 %v154_v58 }
  0x40   :  { %382 = vmatpush1.msra.mxu1 %v154_v58  ;;  %236 = vmatprep.subr.mxu0 %v522_v43 }
  0x41   :  { %356 = vmatprep.subr.mxu1 %v522_v43  ;;  %237 = vmatpush2.msra.mxu0 %v180_v59 }
  0x42   :  { %383 = vmatpush2.msra.mxu1 %v180_v59  ;;  %238 = vmatprep.subr.mxu0 %v522_v43 }
  0x43   :  { %357 = vmatprep.subr.mxu1 %v522_v43  ;;  %239 = vmatpush2.msra.mxu0 %v179_v60 }
  0x44   :  { %384 = vmatpush2.msra.mxu1 %v179_v60  ;;  %240 = vmatprep.subr.mxu0 %v522_v43 }
  0x45   :  { %358 = vmatprep.subr.mxu1 %v522_v43  ;;  %241 = vmatpush2.msra.mxu0 %v178_v61 }
  0x46   :  { %385 = vmatpush2.msra.mxu1 %v178_v61  ;;  %242 = vmatprep.subr.mxu0 %v522_v43 }
  0x47   :  { %359 = vmatprep.subr.mxu1 %v522_v43  ;;  %243 = vmatpush2.msra.mxu0 %v177_v63 }
  0x48   :  { %386 = vmatpush2.msra.mxu1 %v177_v63  ;;  %244 = vmatprep.subr.mxu0 %v522_v43 }
  0x49   :  { %360 = vmatprep.subr.mxu1 %v522_v43  ;;  %245 = vmatpush2.msra.mxu0 %v176_v0 }
  0x4a   :  { %387 = vmatpush2.msra.mxu1 %v176_v0  ;;  %246 = vmatprep.subr.mxu0 %v522_v43 }
  0x4b   :  { %361 = vmatprep.subr.mxu1 %v522_v43  ;;  %247 = vmatpush2.msra.mxu0 %v175_v1 }
  0x4c   :  { %388 = vmatpush2.msra.mxu1 %v175_v1  ;;  %248 = vmatprep.subr.mxu0 %v522_v43 }
  0x4d   :  { %362 = vmatprep.subr.mxu1 %v522_v43 }
  0x9b   :  { %v62_v3 = vpop.permute.xlu0 %61 }
  0x9c   :  { %v64_v4 = vmul.f32 %v62_v3, %v57_v2  ;;  %v173_v3 = vld [vmem:[#allocation3 + $0x98] sm:$0xff] }
  0x9e   :  { %v66_v5 = vsel %vm65_vm0, %v64_v4, 0.0  ;;  %v172_v4 = vld [vmem:[#allocation3 + $0x90] sm:$0xff] }
  0x9f   :  { %v67_v6 = vrot.slane %v66_v5, 4 }
  0xa1   :  { %v68_v7 = vadd.f32 %v67_v6, %v66_v5  ;;  %v171_v5 = vld [vmem:[#allocation3 + $0x88] sm:$0xff] }
  0xa3   :  { %v69_v8 = vrot.slane %v68_v7, 2 }
  0xa5   :  { %v70_v9 = vadd.f32 %v69_v8, %v68_v7  ;;  %v170_v7 = vld [vmem:[#allocation3 + $0x80] sm:$0xff] }
  0xa7   :  { %v71_v10 = vrot.slane %v70_v9, 1 }
  0xa9   :  { %v72_v11 = vadd.f32 %v71_v10, %v70_v9  ;;  %v147_v9 = vld [vmem:[#allocation6 + $0x8] sm:$0xff] }
  0xaa   :  { %v151_v10 = vld [vmem:[#allocation6 + $0x28] sm:$0xff]  ;;  %335 = vmatprep.mubr.msk.f32.mxu0 %vm181_vm5, %v147_v9 }
  0xab   :  { %v73_v12 = vmul.f32 %v72_v11, %v72_v11  ;;  %337 = vmatprep.mubr.msk.f32.mxu1 %vm181_vm5, %v151_v10 }
  0xad   :  { %v75_v13 = vsel %vm74_vm1, %v73_v12, 0.0  ;;  %v146_v12 = vld [vmem:[#allocation6] sm:$0xff] }
  0xae   :  { %76 = vadd.xlane.f32.xlu0 %v75_v13  ;;  %v150_v13 = vld [vmem:[#allocation6 + $0x20] sm:$0xff] }
 0x137   :  { %v77_v14 = vpop.xlane.xlu0 %76 }
 0x138   :  { %v78_v15 = vrot.slane %v77_v14, 4 }
 0x13a   :  { %v79_v16 = vadd.f32 %v78_v15, %v77_v14  ;;  %v149_v15 = vld [vmem:[#allocation6 + $0x18] sm:$0xff] }
 0x13c   :  { %v80_v17 = vrot.slane %v79_v16, 2 }
 0x13e   :  { %v81_v18 = vadd.f32 %v80_v17, %v79_v16  ;;  %v153_v16 = vld [vmem:[#allocation6 + $0x38] sm:$0xff] }
 0x140   :  { %v82_v19 = vrot.slane %v81_v18, 1 }
 0x142   :  { %v83_v20 = vadd.f32 %v82_v19, %v81_v18  ;;  %v148_v18 = vld [vmem:[#allocation6 + $0x10] sm:$0xff] }
 0x143   :  { %v152_v19 = vld [vmem:[#allocation6 + $0x30] sm:$0xff] }
 0x144   :  { %394 = vpush %v83_v20 }
 0x175   :  { %s395_s0 = spop %394 }
 0x176   :  { %v85_v21 = vstv %s395_s0 }
 0x177   :  { %417 = vrsqrt.f32 %v85_v21  ;;  %vm88_vm2 = vcmp.eq.f32.partialorder %v85_v21, inf  ;;  %v91_v24 = vand.u32 2147483648, %v85_v21  ;;  %vm90_vm3 = vcmp.eq.f32.partialorder %v85_v21, 0.0 }
 0x184   :  { %v418_v22 = vpop.eup %417 }
 0x185   :  { %v87_v23 = vmul.f32 %v418_v22, %v85_v21 }
 0x187   :  { %v89_v25 = vsel %vm88_vm2, %v85_v21, %v87_v23 }
 0x188   :  { %v92_v26 = vsel %vm90_vm3, %v91_v24, %v89_v25 }
 0x189   :  { %396 = vpush %v92_v26 }
 0x1ba   :  { %s397_s1 = spop %396 }
 0x1bb   :  { %s94_s4 = sadd.f32 1e-12, %s397_s1 }
 0x1bd   :  { %v95_v27 = vstv %s94_s4 }
 0x1be   :  { %419 = vrcp.f32 %v95_v27 }
 0x1cb   :  { %v420_v28 = vpop.eup %419 }
 0x1cc   :  { %v97_v29 = vmul.f32 %v420_v28, %v72_v11 }
 0x1ce   :  { %v98_v30 = vmul.f32 %v97_v29, %v57_v2  ;;  %144 = vst.msk [vmem:[#allocation9] sm:$0x1] %vm74_vm1, %v97_v29  ;;  %v174_v2 = vld [vmem:[#allocation3 + $0xa0] sm:$0xff] }
 0x1cf   :  { %249 = vmatpush2.msra.mxu0 %v174_v2  ;;  %389 = vmatpush2.msra.mxu1 %v174_v2 }
 0x1d0   :  { %v99_v31 = vsel %vm65_vm0, %v98_v30, 0.0  ;;  %250 = vmatprep.subr.mxu0 %v522_v43  ;;  %363 = vmatprep.subr.mxu1 %v522_v43 }
 0x1d1   :  { %100 = vadd.xlane.f32.xlu1 %v99_v31  ;;  %251 = vmatpush2.msra.mxu0 %v173_v3 }
 0x1d2   :  { %390 = vmatpush2.msra.mxu1 %v173_v3  ;;  %252 = vmatprep.subr.mxu0 %v522_v43 }
 0x1d3   :  { %364 = vmatprep.subr.mxu1 %v522_v43  ;;  %253 = vmatpush2.msra.mxu0 %v172_v4 }
 0x1d4   :  { %391 = vmatpush2.msra.mxu1 %v172_v4  ;;  %254 = vmatprep.subr.mxu0 %v522_v43 }
 0x1d5   :  { %365 = vmatprep.subr.mxu1 %v522_v43  ;;  %255 = vmatpush2.msra.mxu0 %v171_v5 }
 0x1d6   :  { %392 = vmatpush2.msra.mxu1 %v171_v5  ;;  %256 = vmatprep.subr.mxu0 %v522_v43 }
 0x1d7   :  { %366 = vmatprep.subr.mxu1 %v522_v43  ;;  %257 = vmatpush2.msra.mxu0 %v170_v7 }
 0x1d8   :  { %393 = vmatpush2.msra.mxu1 %v170_v7  ;;  %259 = vmatmul.mubr.f32.vlgmr.msra.gmra.mxu0 %v146_v12 }
 0x1d9   :  { %269 = vmatmul.mubr.f32.vlgmr.msra.gmra.mxu1 %v150_v13  ;;  %336 = vmatprep.mubr.msk.f32.mxu0 %vm181_vm5, %v149_v15 }
 0x1da   :  { %338 = vmatprep.mubr.msk.f32.mxu1 %vm181_vm5, %v153_v16 }
 0x1dc   :  { %264 = vmatmul.mubr.f32.gmra.mxu0 %v148_v18 }
 0x1dd   :  { %274 = vmatmul.mubr.f32.gmra.mxu1 %v152_v19 }
 0x25a   :  { %v584_v32 = vpop.xlane.xlu1 %100 }
 0x25b   :  { %v102_v33 = vmul.f32 %v584_v32, %v584_v32 }
 0x25d   :  { %v104_v34 = vsel %vm103_vm4, %v102_v33, 0.0 }
 0x25e   :  { %105 = vadd.xlane.f32.xlu1 %v104_v34 }
 0x298   :  { %v260_v25 = vpop.f32.mrf.mxu0 }
 0x299   :  { %v270_v26 = vpop.f32.mrf.mxu1 }
 0x29a   :  { %v262_v27 = vpop.f32.mrf.mxu0 }
 0x29b   :  { %v272_v28 = vpop.f32.mrf.mxu1 }
 0x29c   :  { %v265_v29 = vpop.f32.mrf.mxu0 }
 0x29d   :  { %v275_v30 = vpop.f32.mrf.mxu1 }
 0x29e   :  { %v267_v31 = vpop.f32.mrf.mxu0 }
 0x29f   :  { %v277_v33 = vpop.f32.mrf.mxu1 }
 0x2e7   :  { %v106_v35 = vpop.xlane.xlu1 %105 }
 0x2e8   :  { %v107_v36 = vrot.slane %v106_v35, 4 }
 0x2ea   :  { %v108_v37 = vadd.f32 %v107_v36, %v106_v35 }
 0x2ec   :  { %v109_v38 = vrot.slane %v108_v37, 2 }
 0x2ee   :  { %v110_v39 = vadd.f32 %v109_v38, %v108_v37 }
 0x2f0   :  { %v111_v40 = vrot.slane %v110_v39, 1 }
 0x2f2   :  { %v112_v41 = vadd.f32 %v111_v40, %v110_v39 }
 0x2f4   :  { %398 = vpush %v112_v41 }
 0x325   :  { %s399_s18 = spop %398 }
 0x326   :  { %v114_v62 = vstv %s399_s18 }
 0x327   :  { %421 = vrsqrt.f32 %v114_v62  ;;  %vm117_vm6 = vcmp.eq.f32.partialorder %v114_v62, inf  ;;  %v120_v11 = vand.u32 2147483648, %v114_v62  ;;  %vm119_vm7 = vcmp.eq.f32.partialorder %v114_v62, 0.0 }
 0x334   :  { %v422_v6 = vpop.eup %421 }
 0x335   :  { %v116_v8 = vmul.f32 %v422_v6, %v114_v62 }
 0x337   :  { %v118_v14 = vsel %vm117_vm6, %v114_v62, %v116_v8 }
 0x338   :  { %v121_v17 = vsel %vm119_vm7, %v120_v11, %v118_v14 }
 0x339   :  { %400 = vpush %v121_v17 }
 0x36a   :  { %s401_s19 = spop %400 }
 0x36b   :  { %s123_s20 = sadd.f32 1e-12, %s401_s19 }
 0x36d   :  { %v124_v20 = vstv %s123_s20 }
 0x36e   :  { %423 = vrcp.f32 %v124_v20 }
 0x37b   :  { %v424_v21 = vpop.eup %423 }
 0x37c   :  { %v126_v22 = vmul.f32 %v424_v21, %v584_v32 }
 0x37e   :  { %v127_v23 = vmul.f32 %v126_v22, %v584_v32  ;;  %143 = vst.msk [vmem:[%s672_s6] sm:$0xff] %vm103_vm4, %v126_v22  ;;  %s471_s6 = scalar_lea.vmem %s320_s24, 32 }
 0x37f   :  { %p473_p12 = scmp.lt.s32.totalorder %s471_s6, %s467_s25 }
 0x380   :  { %v128_v24 = vsel %vm103_vm4, %v127_v23, 0.0 }
 0x381   :  { %129 = vadd.xlane.f32.xlu1 %v128_v24  ;;  %p474_p13 = por %p473_p12, %p472_p11 }
 0x383   :  { %p475_p0 = pnand %p474_p13, %p468_p10 }
 0x40a   :  { %v130_v34 = vpop.xlane.xlu1 %129 }
 0x40b   :  { %v131_v35 = vrot.slane %v130_v34, 4 }
 0x40d   :  { %v132_v36 = vadd.f32 %v131_v35, %v130_v34 }
 0x40f   :  { %v133_v32 = vrot.slane %v132_v36, 2 }
 0x410   :  { %478 = shalt.err (!%p475_p0)
}
 0x411   :  { %322 = dma.vmem_to_hbm [thread:$0]  %s320_s24, 16, %s673_s7, [#allocation10]   ;;  %v134_v37 = vadd.f32 %v133_v32, %v132_v36  ;;  %v339_v43 = vld [vmem:[%s669_s3] ss:$0 sm:$0xff] }
 0x412   :  { %s524_s11 = smov [#allocation8]  }
 0x413   :  { %v135_v38 = vrot.slane %v134_v37, 1  ;;  %s304_s12 = sshll.u32 %s524_s11, 4  ;;  %s305_s12 = int_to_ptr.vmem [resolvable:$true] %s304_s12 }
 0x414   :  { %s487_s7 = scalar_lea.vmem %s305_s12, 512  ;;  %p492_p2 = scmp.lt.s32.totalorder %s305_s12, %s305_s12 }
 0x415   :  { %v136_v39 = vadd.f32 %v135_v38, %v134_v37  ;;  %p488_p1 = scmp.ne.s32.totalorder %s305_s12, %s487_s7  ;;  %p493_p3 = scmp.lt.s32.totalorder %s487_s7, %s487_s7 }
 0x417   :  { %402 = vpush %v136_v39  ;;  %p494_p4 = por %p493_p3, %p492_p2 }
 0x419   :  { %p495_p5 = pnand %p494_p4, %p488_p1 }
 0x448   :  { %s403_s30 = spop %402 }
 0x449   :  { %v138_v40 = vstv %s403_s30 }
 0x44a   :  { %425 = vrcp.f32 %v138_v40 }
 0x457   :  { %v426_v41 = vpop.eup %425 }
 0x458   :  { %404 = vpush %v426_v41 }
 0x489   :  { %s405_s8 = spop %404 }
 0x48a   :  { %v279_v42 = vstv %s405_s8 }
 0x48b   :  { %v280_v44 = vmul.f32 %v279_v42, %v260_v25  ;;  %v281_v45 = vmul.f32 %v279_v42, %v265_v29  ;;  %v282_v46 = vmul.f32 %v279_v42, %v270_v26  ;;  %v283_v47 = vmul.f32 %v279_v42, %v275_v30 }
 0x48d   :  { %v291_v48 = vadd.f32 %v339_v43, %v280_v44  ;;  %v292_v49 = vadd.f32 %v339_v43, %v281_v45  ;;  %v293_v50 = vadd.f32 %v339_v43, %v282_v46  ;;  %v294_v51 = vadd.f32 %v339_v43, %v283_v47 }
 0x48f   :  { %295 = vst [vmem:[#allocation8] sm:$0xff] %v291_v48  ;;  %296 = vst [vmem:[#allocation8 + $0x8] sm:$0xff] %v292_v49 }
 0x490   :  { %297 = vst [vmem:[#allocation8 + $0x10] sm:$0xff] %v293_v50  ;;  %298 = vst [vmem:[#allocation8 + $0x18] sm:$0xff] %v294_v51 }
 0x491   :  { %498 = shalt.err (!%p495_p5)
}
 0x492   :  { %310 = dma.vmem_to_hbm [thread:$0]  %s305_s12, 512, %s671_s5, [#allocation5], %s516_s27, %s516_s27, %s517_s28  }
 0x493   :  { %511 = dma.done.wait [#allocation5], 512  }
 0x494   :  { %512 = vsyncadd [#allocation5], 4294966784 }
 0x495   :  { %513 = dma.done.wait [#allocation10], 16  }
 0x496   :  { %514 = vsyncadd [#allocation10], 4294967280 }
 0x497   :  { %331 = vsyncpa [#allocation4], 1 }
 0x498   :  { %332 = vsyncpa [#allocation7], 1 }
 0x499   :  { %333 = vsyncpa [#allocation5], 1 }
 0x49a   :  { %334 = vsyncpa [#allocation10], 1 }

</bundles_post_ra>
